<compile_context>
chip_gen: v5e
topology: v5e:2x2
jax: 0.10.0
libtpu: 0.0.40
codegen_flags: <defaults>
</compile_context>

<pallas_src>
import functools

import jax
import jax.numpy as jnp
from jax.experimental import pallas as pl
from jax.experimental.pallas import tpu as pltpu


def _round_up(v, m):
    return (v + m - 1) // m * m


def _vmem_capacity_bytes():
    """Chip VMEM capacity (v5e/v6e: 128 MiB, v7x: 64 MiB); conservative fallback."""
    try:
        return int(pltpu.get_tpu_info().vmem_capacity_bytes)
    except Exception:
        return 64 * 1024 * 1024


def _pwffn_resident_kernel(x_ref, w1_ref, b1_ref, w2_ref, b2_ref, o_ref):
    # Weights/biases have constant block indices across the grid, so the Pallas
    # pipeline copies them HBM->VMEM once; only x/out tiles stream per step.
    x = x_ref[...]
    h = jnp.dot(x, w1_ref[...], preferred_element_type=jnp.float32)
    h = jnp.maximum(h + b1_ref[...].astype(jnp.float32), 0.0)          # ReLU
    # Dropout: identity (eval mode).
    y = jnp.dot(h.astype(w2_ref.dtype), w2_ref[...],
                preferred_element_type=jnp.float32)
    o_ref[...] = (y + b2_ref[...].astype(jnp.float32)).astype(o_ref.dtype)


def _pwffn_ktiled_kernel(x_ref, w1_ref, b1_ref, w2_ref, b2_ref, o_ref, acc_ref):
    # grid = (row_tiles, dff_tiles); k is the d_ff reduction axis.
    k = pl.program_id(1)

    @pl.when(k == 0)
    def _():
        acc_ref[...] = jnp.zeros_like(acc_ref)

    x = x_ref[...]
    h = jnp.dot(x, w1_ref[...], preferred_element_type=jnp.float32)
    h = jnp.maximum(h + b1_ref[...].astype(jnp.float32), 0.0)          # ReLU
    acc_ref[...] += jnp.dot(h.astype(w2_ref.dtype), w2_ref[...],
                            preferred_element_type=jnp.float32)

    @pl.when(k == pl.num_programs(1) - 1)
    def _():
        o_ref[...] = (acc_ref[...] + b2_ref[...].astype(jnp.float32)
                      ).astype(o_ref.dtype)


@functools.partial(jax.jit,
                   static_argnames=("tm", "tf", "use_bf16_matmul", "force_ktiled"))
def pwffn(x, w1, b1, w2, b2, *, tm=None, tf=None,
          use_bf16_matmul=False, force_ktiled=False):
    """x: (..., d_model) -> (..., d_model);  w1: (d_model, d_ff), w2: (d_ff, d_model)."""
    d_model = x.shape[-1]
    d_ff = w1.shape[-1]
    orig_shape = x.shape
    out_dtype = x.dtype

    x2d = x.reshape(-1, d_model)                                      # (N, d_model)
    n = x2d.shape[0]

    b1 = jnp.asarray(b1).reshape(1, -1)
    b2 = jnp.asarray(b2).reshape(1, -1)

    # Optional MXU-rate path for f32-stored params: one-time downcast to bf16;
    # matmuls still accumulate in f32 in-kernel.
    if use_bf16_matmul and jnp.dtype(w1.dtype) == jnp.float32:
        x2d = x2d.astype(jnp.bfloat16)
        w1 = w1.astype(jnp.bfloat16)
        w2 = w2.astype(jnp.bfloat16)

    x_itemsize = jnp.dtype(x2d.dtype).itemsize
    o_itemsize = jnp.dtype(out_dtype).itemsize
    w_itemsize = jnp.dtype(w1.dtype).itemsize

    # ---- lane-dense sizes (lane axis padded to multiples of 128) ------------
    dm_pad = _round_up(d_model, 128)
    dff_pad = _round_up(d_ff, 128)

    # ---- row tile: sublane/MXU aligned, dtype-aware default -----------------
    sub = {4: 8, 2: 16, 1: 32}.get(x_itemsize, 8)
    if tm is None:
        tm = 512 if x_itemsize <= 2 else 256
    tm_eff = _round_up(min(tm, _round_up(n, sub)), sub)
    n_pad = _round_up(n, tm_eff)
    row_tiles = n_pad // tm_eff

    # ---- chip-aware VMEM budget ----------------------------------------------
    vmem_budget = int(_vmem_capacity_bytes() * 0.85)     # headroom for compiler scratch

    # ---- weights-resident fast-path feasibility ------------------------------
    w_bytes = (dm_pad * dff_pad + dff_pad * dm_pad + dff_pad + dm_pad) * w_itemsize
    resident_vmem = int(
        2 * w_bytes                                        # pipeline allocs 2 buffers
        + 2 * tm_eff * dm_pad * (x_itemsize + o_itemsize)  # streamed x / out tiles
        + tm_eff * dff_pad * 4                             # f32 h intermediate
        + tm_eff * dm_pad * 4)                             # f32 y before downcast
    use_resident = (not force_ktiled) and int(1.3 * resident_vmem) <= vmem_budget

    # ---- k-tiled fallback: divisor-based, VMEM-fitted d_ff tile --------------
    tf_eff, dff_tiles = dff_pad, 1
    if not use_resident:
        if tf is None:
            tf = 2048
        fixed = (2 * tm_eff * dm_pad * (x_itemsize + o_itemsize)   # x / out tiles
                 + 2 * tm_eff * dm_pad * 4                          # acc + finalize temp
                 + 2 * dm_pad * w_itemsize)                         # b2
        per_tf_col = (4 * dm_pad * w_itemsize   # W1 + W2 tiles, double-buffered
                      + 2 * w_itemsize          # b1 tile
                      + tm_eff * 4)             # f32 h chunk
        tf_cap = max((vmem_budget - fixed) // per_tf_col, 128)
        tf_target = max(min(tf, tf_cap, dff_pad), 128)
        q = dff_pad // 128
        best = 1
        for div in range(1, q + 1):             # largest 128-multiple dividing dff_pad
            if q % div == 0 and div * 128 <= tf_target:
                best = div
        tf_eff = best * 128
        dff_tiles = dff_pad // tf_eff

    # ---- zero-pad only when needed (row + lane pad of x fused) ---------------
    if (n_pad != n) or (dm_pad != d_model):
        x2d = jnp.pad(x2d, ((0, n_pad - n), (0, dm_pad - d_model)))
    if (dm_pad != d_model) or (dff_pad != d_ff):
        w1 = jnp.pad(w1, ((0, dm_pad - d_model), (0, dff_pad - d_ff)))
        w2 = jnp.pad(w2, ((0, dff_pad - d_ff), (0, dm_pad - d_model)))
    if dff_pad != d_ff:
        b1 = jnp.pad(b1, ((0, 0), (0, dff_pad - d_ff)))
    if dm_pad != d_model:
        b2 = jnp.pad(b2, ((0, 0), (0, dm_pad - d_model)))

    # ---- advisory cost estimate (weight traffic of the chosen schedule) ------
    weight_stream = (dm_pad * dff_pad + dff_pad * dm_pad) * w_itemsize
    weight_stream *= 1 if use_resident else row_tiles
    cost = pl.CostEstimate(
        flops=4 * n_pad * dm_pad * dff_pad,               # two matmuls
        transcendentals=0,
        bytes_accessed=int(n_pad * dm_pad * (x_itemsize + o_itemsize)
                           + weight_stream
                           + (dff_pad + dm_pad) * w_itemsize),
    )

    if use_resident:
        out = pl.pallas_call(
            _pwffn_resident_kernel,
            out_shape=jax.ShapeDtypeStruct((n_pad, dm_pad), out_dtype),
            grid_spec=pltpu.PrefetchScalarGridSpec(
                num_scalar_prefetch=0,
                grid=(row_tiles,),
                in_specs=[
                    pl.BlockSpec((tm_eff, dm_pad), lambda i: (i, 0)),    # x rows
                    pl.BlockSpec((dm_pad, dff_pad), lambda i: (0, 0)),   # W1 (resident)
                    pl.BlockSpec((1, dff_pad), lambda i: (0, 0)),        # b1 (resident)
                    pl.BlockSpec((dff_pad, dm_pad), lambda i: (0, 0)),   # W2 (resident)
                    pl.BlockSpec((1, dm_pad), lambda i: (0, 0)),         # b2 (resident)
                ],
                out_specs=pl.BlockSpec((tm_eff, dm_pad), lambda i: (i, 0)),
            ),
            compiler_params=pltpu.CompilerParams(
                dimension_semantics=("parallel",),
                vmem_limit_bytes=vmem_budget,
            ),
            cost_estimate=cost,
        )(x2d, w1, b1, w2, b2)
    else:
        out = pl.pallas_call(
            _pwffn_ktiled_kernel,
            out_shape=jax.ShapeDtypeStruct((n_pad, dm_pad), out_dtype),
            grid_spec=pltpu.PrefetchScalarGridSpec(
                num_scalar_prefetch=0,
                grid=(row_tiles, dff_tiles),
                in_specs=[
                    pl.BlockSpec((tm_eff, dm_pad), lambda i, k: (i, 0)),   # x rows
                    pl.BlockSpec((dm_pad, tf_eff), lambda i, k: (0, k)),   # W1 chunk
                    pl.BlockSpec((1, tf_eff), lambda i, k: (0, k)),        # b1 chunk
                    pl.BlockSpec((tf_eff, dm_pad), lambda i, k: (k, 0)),   # W2 chunk
                    pl.BlockSpec((1, dm_pad), lambda i, k: (0, 0)),        # b2
                ],
                out_specs=pl.BlockSpec((tm_eff, dm_pad), lambda i, k: (i, 0)),
                scratch_shapes=[pltpu.VMEM((tm_eff, dm_pad), jnp.float32)],
            ),
            compiler_params=pltpu.CompilerParams(
                dimension_semantics=("parallel", "arbitrary"),
                vmem_limit_bytes=vmem_budget,
            ),
            cost_estimate=cost,
        )(x2d, w1, b1, w2, b2)

    return out[:n, :d_model].reshape(orig_shape)


def _init_params(key, d_model, d_ff, dtype=jnp.float32):
    """Deterministic init mimicking nn.Linear's U(-1/sqrt(fan_in), 1/sqrt(fan_in))."""
    k1, k2, k3, k4 = jax.random.split(key, 4)
    bound1 = 1.0 / (d_model ** 0.5)
    bound2 = 1.0 / (d_ff ** 0.5)
    w1 = jax.random.uniform(k1, (d_model, d_ff), dtype, -bound1, bound1)
    b1 = jax.random.uniform(k2, (d_ff,), dtype, -bound1, bound1)
    w2 = jax.random.uniform(k3, (d_ff, d_model), dtype, -bound2, bound2)
    b2 = jax.random.uniform(k4, (d_model,), dtype, -bound2, bound2)
    return w1, b1, w2, b2


if __name__ == "__main__":
    # Highest matmul precision so the pure-JAX references (and the in-kernel f32
    # dots) are directly comparable at tight tolerance on TPU.
    jax.config.update("jax_default_matmul_precision", "highest")

    batch, seq, d_model, d_ff = 2, 8, 32, 64

    key = jax.random.PRNGKey(0)
    kx, kp, kp2 = jax.random.split(key, 3)
    x = jax.random.normal(kx, (batch, seq, d_model), jnp.float32)
    w1, b1, w2, b2 = _init_params(kp, d_model, d_ff, jnp.float32)

    # ---- f32 storage, weights-resident fast path ----------------------------
    out = jax.block_until_ready(pwffn(x, w1, b1, w2, b2))
    ref = jnp.maximum(x @ w1 + b1, 0.0) @ w2 + b2
    assert out.shape == x.shape
    assert jnp.allclose(out, ref, atol=1e-4, rtol=1e-4), "f32 mismatch vs reference"

    # ---- bf16 storage (MXU-native), f32 accumulation in-kernel --------------
    xb = x.astype(jnp.bfloat16)
    w1b, b1b, w2b, b2b = (p.astype(jnp.bfloat16) for p in (w1, b1, w2, b2))
    out_b = jax.block_until_ready(pwffn(xb, w1b, b1b, w2b, b2b))
    ref_b = (jnp.maximum(xb.astype(jnp.float32) @ w1b.astype(jnp.float32)
                         + b1b.astype(jnp.float32), 0.0)
             @ w2b.astype(jnp.float32) + b2b.astype(jnp.float32))
    assert out_b.shape == x.shape
    assert jnp.allclose(out_b.astype(jnp.float32), ref_b, atol=5e-2, rtol=5e-2), \
        "bf16 mismatch vs reference"

    # ---- k-tiled fallback path (forced), 2 reduction steps over d_ff --------
    d_ff2 = 256
    w1c, b1c, w2c, b2c = _init_params(kp2, d_model, d_ff2, jnp.float32)
    out_k = jax.block_until_ready(
        pwffn(x, w1c, b1c, w2c, b2c, tf=128, force_ktiled=True))
    ref_k = jnp.maximum(x @ w1c + b1c, 0.0) @ w2c + b2c
    assert out_k.shape == x.shape
    assert jnp.allclose(out_k, ref_k, atol=1e-4, rtol=1e-4), "k-tiled mismatch vs reference"

    print("KERNEL_OK")
</pallas_src>

<mosaic_0001>
module attributes {stable_mosaic.version = 11 : i64} {
  func.func @_pwffn_resident_kernel(%arg0: i32, %arg1: memref<16x128xf32, #tpu.memory_space<vmem>>, %arg2: memref<128x128xf32, #tpu.memory_space<vmem>>, %arg3: memref<1x128xf32, #tpu.memory_space<vmem>>, %arg4: memref<128x128xf32, #tpu.memory_space<vmem>>, %arg5: memref<1x128xf32, #tpu.memory_space<vmem>>, %arg6: memref<16x128xf32, #tpu.memory_space<vmem>>) attributes {dimension_semantics = [#tpu.dimension_semantics<parallel>], iteration_bounds = array<i64: 1>, scalar_prefetch = 0 : i64, scratch_operands = 0 : i64, tpu.core_type = #tpu.core_type<tc>, window_params = [{transform_indices = @transform_0, window_bounds = array<i64: 16, 128>}, {pipeline_mode = #tpu.pipeline_mode<synchronous>, transform_indices = @transform_1, window_bounds = array<i64: 128, 128>}, {pipeline_mode = #tpu.pipeline_mode<synchronous>, transform_indices = @transform_2, window_bounds = array<i64: 1, 128>}, {pipeline_mode = #tpu.pipeline_mode<synchronous>, transform_indices = @transform_3, window_bounds = array<i64: 128, 128>}, {pipeline_mode = #tpu.pipeline_mode<synchronous>, transform_indices = @transform_4, window_bounds = array<i64: 1, 128>}, {transform_indices = @transform_5, window_bounds = array<i64: 16, 128>}]} {
    %c0 = arith.constant 0 : index
    %c0_0 = arith.constant 0 : index
    %0 = vector.load %arg1[%c0, %c0_0] : memref<16x128xf32, #tpu.memory_space<vmem>>, vector<16x128xf32>
    %c0_1 = arith.constant 0 : index
    %c0_2 = arith.constant 0 : index
    %1 = vector.load %arg2[%c0_1, %c0_2] : memref<128x128xf32, #tpu.memory_space<vmem>>, vector<128x128xf32>
    %cst = arith.constant dense<0.000000e+00> : vector<16x128xf32>
    %2 = tpu.matmul %0, %1, %cst {dimension_numbers = #tpu.dot_dimension_numbers<[1], [0], [0], [1], [0, 0, 1, 1], [], []>, precision = #tpu.contract_precision<fp32>} : vector<16x128xf32>, vector<128x128xf32>, vector<16x128xf32> -> vector<16x128xf32>
    %c0_3 = arith.constant 0 : index
    %c0_4 = arith.constant 0 : index
    %3 = vector.load %arg3[%c0_3, %c0_4] : memref<1x128xf32, #tpu.memory_space<vmem>>, vector<1x128xf32>
    %4 = vector.broadcast %3 : vector<1x128xf32> to vector<16x128xf32>
    %5 = arith.addf %2, %4 : vector<16x128xf32>
    %cst_5 = arith.constant 0.000000e+00 : f32
    %6 = vector.broadcast %cst_5 : f32 to vector<16x128xf32>
    %7 = arith.maximumf %5, %6 : vector<16x128xf32>
    %c0_6 = arith.constant 0 : index
    %c0_7 = arith.constant 0 : index
    %8 = vector.load %arg4[%c0_6, %c0_7] : memref<128x128xf32, #tpu.memory_space<vmem>>, vector<128x128xf32>
    %cst_8 = arith.constant dense<0.000000e+00> : vector<16x128xf32>
    %9 = tpu.matmul %7, %8, %cst_8 {dimension_numbers = #tpu.dot_dimension_numbers<[1], [0], [0], [1], [0, 0, 1, 1], [], []>, precision = #tpu.contract_precision<fp32>} : vector<16x128xf32>, vector<128x128xf32>, vector<16x128xf32> -> vector<16x128xf32>
    %c0_9 = arith.constant 0 : index
    %c0_10 = arith.constant 0 : index
    %10 = vector.load %arg5[%c0_9, %c0_10] : memref<1x128xf32, #tpu.memory_space<vmem>>, vector<1x128xf32>
    %11 = vector.broadcast %10 : vector<1x128xf32> to vector<16x128xf32>
    %12 = arith.addf %9, %11 : vector<16x128xf32>
    %c0_11 = arith.constant 0 : index
    %c0_12 = arith.constant 0 : index
    %13 = vector.load %arg6[%c0_11, %c0_12] : memref<16x128xf32, #tpu.memory_space<vmem>>, vector<16x128xf32>
    tpu.vector_store %arg6[%c0_11, %c0_12], %12 {strides = array<i32>} : memref<16x128xf32, #tpu.memory_space<vmem>>, vector<16x128xf32>,
    return
  }
  func.func @transform_0(%arg0: i32) -> (i32, i32) {
    %c0_i32 = arith.constant 0 : i32
    %c0_i32_0 = arith.constant 0 : i32
    return %arg0, %c0_i32 : i32, i32
  }
  func.func @transform_1(%arg0: i32) -> (i32, i32) {
    %c0_i32 = arith.constant 0 : i32
    %c0_i32_0 = arith.constant 0 : i32
    %c0_i32_1 = arith.constant 0 : i32
    return %c0_i32, %c0_i32_0 : i32, i32
  }
  func.func @transform_2(%arg0: i32) -> (i32, i32) {
    %c0_i32 = arith.constant 0 : i32
    %c0_i32_0 = arith.constant 0 : i32
    %c0_i32_1 = arith.constant 0 : i32
    return %c0_i32, %c0_i32_0 : i32, i32
  }
  func.func @transform_3(%arg0: i32) -> (i32, i32) {
    %c0_i32 = arith.constant 0 : i32
    %c0_i32_0 = arith.constant 0 : i32
    %c0_i32_1 = arith.constant 0 : i32
    return %c0_i32, %c0_i32_0 : i32, i32
  }
  func.func @transform_4(%arg0: i32) -> (i32, i32) {
    %c0_i32 = arith.constant 0 : i32
    %c0_i32_0 = arith.constant 0 : i32
    %c0_i32_1 = arith.constant 0 : i32
    return %c0_i32, %c0_i32_0 : i32, i32
  }
  func.func @transform_5(%arg0: i32) -> (i32, i32) {
    %c0_i32 = arith.constant 0 : i32
    %c0_i32_0 = arith.constant 0 : i32
    return %arg0, %c0_i32 : i32, i32
  }
}

</mosaic_0001>

<bundles_post_ra>
// kernel: pwffn.1
= control target key start
LH: loop header
LB: loop body
LE: loop exit
PB: predicated region body
PF: predicated region fallthrough
CT: control target
= control target key end

     0   :  { %s1426_s1 = inlined_call_operand.vmem [shape: f32[128,128], index: 1, kind: input, shape index: {}]   ;;  %s1427_s2 = inlined_call_operand.vmem [shape: f32[1,128], index: 2, kind: input, shape index: {}]   ;;  %s1428_s0 = inlined_call_operand.vmem [shape: f32[16,128], index: 0, kind: input, shape index: {}]   ;;  %s1429_s3 = inlined_call_operand.vmem [shape: f32[128,128], index: 3, kind: input, shape index: {}]   ;;  %s1430_s4 = inlined_call_operand.vmem [shape: f32[1,128], index: 4, kind: input, shape index: {}]   ;;  %s1431_s5 = inlined_call_operand.vmem [shape: f32[16,128], index: 5, kind: output, shape index: {}]  }
   0x1   :  { %v37_v0 = vld [vmem:[%s1426_s1 + $0x78] sm:$0xff]  ;;  %v36_v1 = vld [vmem:[%s1426_s1 + $0x70] sm:$0xff]  ;;  %v35_v2 = vld [vmem:[%s1426_s1 + $0x68] sm:$0xff] }
   0x2   :  { %v855_v3 = vand.u32 4294901760, %v37_v0  ;;  %v857_v4 = vand.u32 4294901760, %v36_v1  ;;  %v859_v5 = vand.u32 4294901760, %v35_v2  ;;  %v34_v6 = vld [vmem:[%s1426_s1 + $0x60] sm:$0xff]  ;;  %v33_v7 = vld [vmem:[%s1426_s1 + $0x58] sm:$0xff]  ;;  %v32_v8 = vld [vmem:[%s1426_s1 + $0x50] sm:$0xff] }
   0x3   :  { %v870_v9 = vand.u32 4294901760, %v34_v6  ;;  %v872_v10 = vand.u32 4294901760, %v33_v7  ;;  %v874_v11 = vand.u32 4294901760, %v32_v8  ;;  %v31_v12 = vld [vmem:[%s1426_s1 + $0x48] sm:$0xff]  ;;  %v30_v13 = vld [vmem:[%s1426_s1 + $0x40] sm:$0xff]  ;;  %v29_v18 = vld [vmem:[%s1426_s1 + $0x38] sm:$0xff] }
   0x4   :  { %43 = vmatpush.msra.mxu0 %v855_v3  ;;  %v884_v14 = vsub.f32 %v37_v0, %v855_v3  ;;  %v887_v15 = vsub.f32 %v36_v1, %v857_v4  ;;  %v889_v16 = vand.u32 4294901760, %v31_v12  ;;  %v892_v17 = vsub.f32 %v35_v2, %v859_v5  ;;  %256 = vmatpush.msra.mxu3 %v855_v3  ;;  %v28_v25 = vld [vmem:[%s1426_s1 + $0x30] sm:$0xff]  ;;  %v27_v33 = vld [vmem:[%s1426_s1 + $0x28] sm:$0xff]  ;;  %v26_v40 = vld [vmem:[%s1426_s1 + $0x20] sm:$0xff] }
   0x5   :  { %v899_v19 = vsub.f32 %v34_v6, %v870_v9  ;;  %v902_v20 = vsub.f32 %v33_v7, %v872_v10  ;;  %v908_v24 = vand.u32 4294901760, %v30_v13  ;;  %v915_v27 = vand.u32 4294901760, %v29_v18  ;;  %v25_v46 = vld [vmem:[%s1426_s1 + $0x18] sm:$0xff]  ;;  %v24_v52 = vld [vmem:[%s1426_s1 + $0x10] sm:$0xff]  ;;  %v23_v58 = vld [vmem:[%s1426_s1 + $0x8] sm:$0xff] }
   0x6   :  { %45 = vmatpush.msra.mxu0 %v857_v4  ;;  %v93_v21 = vand.u32 4294901760, %v884_v14  ;;  %v99_v22 = vand.u32 4294901760, %v887_v15  ;;  %v105_v23 = vand.u32 4294901760, %v892_v17  ;;  %198 = vmatpush.msra.mxu2 %v884_v14  ;;  %v919_v29 = vsub.f32 %v32_v8, %v874_v11  ;;  %v20_v61 = vld [vmem:[%s1428_s0] sm:$0xff] }
   0x7   :  { %v111_v26 = vand.u32 4294901760, %v899_v19  ;;  %v117_v28 = vand.u32 4294901760, %v902_v20  ;;  %258 = vmatpush.msra.mxu3 %v857_v4  ;;  %v936_v34 = vsub.f32 %v31_v12, %v889_v16  ;;  %v938_v35 = vand.u32 4294901760, %v28_v25  ;;  %v22_v1 = vld [vmem:[%s1426_s1] sm:$0xff] }
   0x8   :  { %47 = vmatpush.msra.mxu0 %v859_v5  ;;  %v94_v30 = vsub.f32 %v884_v14, %v93_v21  ;;  %v100_v31 = vsub.f32 %v887_v15, %v99_v22  ;;  %v106_v32 = vsub.f32 %v892_v17, %v105_v23  ;;  %201 = vmatpush.msra.mxu2 %v887_v15  ;;  %v123_v39 = vand.u32 4294901760, %v919_v29  ;;  %v429_v15 = vld [vmem:[%s1429_s3 + $0x68] sm:$0xff] }
   0x9   :  { %260 = vmatpush.msra.mxu3 %v859_v5  ;;  %v112_v38 = vsub.f32 %v899_v19, %v111_v26  ;;  %v950_v41 = vand.u32 4294901760, %v27_v33  ;;  %v953_v42 = vsub.f32 %v30_v13, %v908_v24  ;;  %v118_v44 = vsub.f32 %v902_v20, %v117_v28 }
   0xa   :  { %49 = vmatpush.msra.mxu0 %v870_v9  ;;  %v95_v36 = vand.u32 4294901760, %v94_v30  ;;  %v101_v37 = vand.u32 4294901760, %v100_v31  ;;  %204 = vmatpush.msra.mxu2 %v892_v17  ;;  %v107_v43 = vand.u32 4294901760, %v106_v32  ;;  %v129_v45 = vand.u32 4294901760, %v936_v34  ;;  %v21_v31 = vld [vmem:[%s1428_s0 + $0x8] sm:$0xff] }
   0xb   :  { %262 = vmatpush.msra.mxu3 %v870_v9  ;;  %v966_v47 = vsub.f32 %v29_v18, %v915_v27  ;;  %v968_v48 = vand.u32 4294901760, %v26_v40  ;;  %v113_v49 = vand.u32 4294901760, %v112_v38  ;;  %v124_v50 = vsub.f32 %v919_v29, %v123_v39 }
   0xc   :  { %51 = vmatpush.msra.mxu0 %v872_v10  ;;  %96 = vmatpush.msra.mxu1 %v95_v36  ;;  %v135_v51 = vand.u32 4294901760, %v953_v42  ;;  %v981_v53 = vsub.f32 %v28_v25, %v938_v35  ;;  %v983_v54 = vand.u32 4294901760, %v25_v46  ;;  %v119_v55 = vand.u32 4294901760, %v118_v44 }
   0xd   :  { %207 = vmatpush.msra.mxu2 %v899_v19  ;;  %264 = vmatpush.msra.mxu3 %v872_v10  ;;  %v130_v56 = vsub.f32 %v936_v34, %v129_v45  ;;  %v141_v57 = vand.u32 4294901760, %v966_v47  ;;  %v996_v59 = vsub.f32 %v27_v33, %v950_v41  ;;  %v998_v60 = vand.u32 4294901760, %v24_v52  ;;  %v428_v19 = vld [vmem:[%s1429_s3 + $0x60] sm:$0xff] }
   0xe   :  { %53 = vmatpush.msra.mxu0 %v874_v11  ;;  %102 = vmatpush.msra.mxu1 %v101_v37  ;;  %v125_v62 = vand.u32 4294901760, %v124_v50  ;;  %v136_v63 = vsub.f32 %v953_v42, %v135_v51  ;;  %v147_v0 = vand.u32 4294901760, %v981_v53  ;;  %v1014_v2 = vsub.f32 %v26_v40, %v968_v48 }
   0xf   :  { %210 = vmatpush.msra.mxu2 %v902_v20  ;;  %266 = vmatpush.msra.mxu3 %v874_v11  ;;  %v1016_v6 = vand.u32 4294901760, %v23_v58  ;;  %v1020_v7 = vsub.f32 %v25_v46, %v983_v54  ;;  %v131_v8 = vand.u32 4294901760, %v130_v56  ;;  %v142_v12 = vsub.f32 %v966_v47, %v141_v57  ;;  %v427_v20 = vld [vmem:[%s1429_s3 + $0x58] sm:$0xff] }
  0x10   :  { %55 = vmatpush.msra.mxu0 %v889_v16  ;;  %108 = vmatpush.msra.mxu1 %v107_v43  ;;  %v153_v13 = vand.u32 4294901760, %v996_v59  ;;  %v1028_v18 = vand.u32 4294901760, %v20_v61  ;;  %v1030_v25 = vand.u32 4294901760, %v22_v1  ;;  %v1034_v30 = vsub.f32 %v24_v52, %v998_v60 }
  0x11   :  { %213 = vmatpush.msra.mxu2 %v919_v29  ;;  %268 = vmatpush.msra.mxu3 %v889_v16  ;;  %v137_v32 = vand.u32 4294901760, %v136_v63  ;;  %v148_v33 = vsub.f32 %v981_v53, %v147_v0  ;;  %v159_v36 = vand.u32 4294901760, %v1014_v2  ;;  %v165_v38 = vand.u32 4294901760, %v1020_v7 }
  0x12   :  { %57 = vmatpush.msra.mxu0 %v908_v24  ;;  %114 = vmatpush.msra.mxu1 %v113_v49  ;;  %v1046_v37 = vsub.f32 %v20_v61, %v1028_v18  ;;  %v1051_v40 = vsub.f32 %v23_v58, %v1016_v6  ;;  %v143_v43 = vand.u32 4294901760, %v142_v12  ;;  %v154_v44 = vsub.f32 %v996_v59, %v153_v13 }
  0x13   :  { %216 = vmatpush.msra.mxu2 %v936_v34  ;;  %270 = vmatpush.msra.mxu3 %v908_v24  ;;  %v1059_v49 = vand.u32 4294901760, %v21_v31  ;;  %v149_v50 = vand.u32 4294901760, %v148_v33  ;;  %v160_v52 = vsub.f32 %v1014_v2, %v159_v36  ;;  %v1069_v56 = vsub.f32 %v22_v1, %v1030_v25 }
  0x14   :  { %59 = vmatpush.msra.mxu0 %v915_v27  ;;  %120 = vmatpush.msra.mxu1 %v119_v55  ;;  %v76_v46 = vand.u32 4294901760, %v1046_v37  ;;  %v171_v55 = vand.u32 4294901760, %v1034_v30  ;;  %v177_v58 = vand.u32 4294901760, %v1051_v40  ;;  %v155_v61 = vand.u32 4294901760, %v154_v44 }
  0x15   :  { %219 = vmatpush.msra.mxu2 %v953_v42  ;;  %272 = vmatpush.msra.mxu3 %v915_v27  ;;  %v161_v1 = vand.u32 4294901760, %v160_v52  ;;  %v1140_v17 = vand.u32 4294901760, %v429_v15 }
  0x16   :  { %61 = vmatpush.msra.mxu0 %v938_v35  ;;  %126 = vmatpush.msra.mxu1 %v125_v62  ;;  %v166_v62 = vsub.f32 %v1020_v7, %v165_v38  ;;  %v77_v63 = vsub.f32 %v1046_v37, %v76_v46  ;;  %v172_v12 = vsub.f32 %v1034_v30, %v171_v55 }
  0x17   :  { %222 = vmatpush.msra.mxu2 %v966_v47  ;;  %274 = vmatpush.msra.mxu3 %v938_v35  ;;  %v178_v33 = vsub.f32 %v1051_v40, %v177_v58  ;;  %v1171_v34 = vsub.f32 %v429_v15, %v1140_v17 }
  0x18   :  { %63 = vmatpush.msra.mxu0 %v950_v41  ;;  %132 = vmatpush.msra.mxu1 %v131_v8  ;;  %v83_v8 = vsub.f32 %v21_v31, %v1059_v49  ;;  %v167_v31 = vand.u32 4294901760, %v166_v62 }
  0x19   :  { %225 = vmatpush.msra.mxu2 %v981_v53  ;;  %276 = vmatpush.msra.mxu3 %v950_v41 }
  0x1a   :  { %65 = vmatpush.msra.mxu0 %v968_v48  ;;  %138 = vmatpush.msra.mxu1 %v137_v32  ;;  %v183_v32 = vand.u32 4294901760, %v1069_v56  ;;  %v84_v44 = vand.u32 4294901760, %v83_v8 }
  0x1b   :  { %228 = vmatpush.msra.mxu2 %v996_v59  ;;  %278 = vmatpush.msra.mxu3 %v968_v48 }
  0x1c   :  { %67 = vmatpush.msra.mxu0 %v983_v54  ;;  %144 = vmatpush.msra.mxu1 %v143_v43  ;;  %v78_v43 = vand.u32 4294901760, %v77_v63  ;;  %v184_v52 = vsub.f32 %v1069_v56, %v183_v32  ;;  %v85_v62 = vsub.f32 %v83_v8, %v84_v44 }
  0x1d   :  { %231 = vmatpush.msra.mxu2 %v1014_v2  ;;  %280 = vmatpush.msra.mxu3 %v983_v54 }
  0x1e   :  { %69 = vmatpush.msra.mxu0 %v998_v60  ;;  %150 = vmatpush.msra.mxu1 %v149_v50  ;;  %v173_v50 = vand.u32 4294901760, %v172_v12  ;;  %v185_v63 = vand.u32 4294901760, %v184_v52  ;;  %v86_v14 = vand.u32 4294901760, %v85_v62 }
  0x1f   :  { %234 = vmatpush.msra.mxu2 %v1020_v7  ;;  %282 = vmatpush.msra.mxu3 %v998_v60 }
  0x20   :  { %71 = vmatpush.msra.mxu0 %v1016_v6  ;;  %156 = vmatpush.msra.mxu1 %v155_v61  ;;  %v179_v61 = vand.u32 4294901760, %v178_v33 }
  0x21   :  { %237 = vmatpush.msra.mxu2 %v1034_v30  ;;  %284 = vmatpush.msra.mxu3 %v1016_v6 }
  0x22   :  { %73 = vmatpush.msra.mxu0 %v1030_v25  ;;  %162 = vmatpush.msra.mxu1 %v161_v1 }
  0x23   :  { %240 = vmatpush.msra.mxu2 %v1051_v40  ;;  %79 = vmatmul.f32.vlgmr.msra.gmra.mxu0 %v78_v43 }
  0x24   :  { %303 = vmatpush.msrb.mxu0 %v93_v21  ;;  %168 = vmatpush.msra.mxu1 %v167_v31  ;;  %v426_v21 = vld [vmem:[%s1429_s3 + $0x50] sm:$0xff]  ;;  %v420_v31 = vld [vmem:[%s1429_s3 + $0x20] sm:$0xff] }
  0x25   :  { %243 = vmatpush.msra.mxu2 %v1069_v56  ;;  %286 = vmatpush.msra.mxu3 %v1030_v25  ;;  %v1295_v33 = vand.u32 4294901760, %v420_v31 }
  0x26   :  { %307 = vmatpush.msrb.mxu0 %v99_v22  ;;  %174 = vmatpush.msra.mxu1 %v173_v50  ;;  %v1154_v22 = vand.u32 4294901760, %v427_v20 }
  0x27   :  { %246 = vmatmul.f32.vlgmr.msra.gmra.mxu2 %v1046_v37  ;;  %290 = vmatmul.f32.vlgmr.msra.gmra.mxu3 %v76_v46  ;;  %v1309_v52 = vsub.f32 %v420_v31, %v1295_v33 }
  0x28   :  { %311 = vmatpush.msrb.mxu0 %v105_v23  ;;  %180 = vmatpush.msra.mxu1 %v179_v61  ;;  %v1156_v23 = vand.u32 4294901760, %v426_v21  ;;  %v1178_v42 = vsub.f32 %v427_v20, %v1154_v22  ;;  %v419_v20 = vld [vmem:[%s1429_s3 + $0x18] sm:$0xff] }
  0x2a   :  { %315 = vmatpush.msrb.mxu0 %v111_v26  ;;  %186 = vmatpush.msra.mxu1 %v185_v63  ;;  %v425_v26 = vld [vmem:[%s1429_s3 + $0x48] sm:$0xff]  ;;  %v511_v46 = vand.u32 4294901760, %v1178_v42 }
  0x2b   :  { %87 = vmatmul.f32.gmra.mxu0 %v86_v14  ;;  %188 = vmatmul.f32.vlgmr.msra.gmra.mxu1 %v1028_v18  ;;  %v1189_v53 = vand.u32 4294901760, %v425_v26  ;;  %v553_v14 = vand.u32 4294901760, %v1309_v52 }
  0x2c   :  { %319 = vmatpush.msrb.mxu0 %v117_v28  ;;  %374 = vmatpush.msrb.mxu1 %v855_v3  ;;  %v431_v3 = vld [vmem:[%s1429_s3 + $0x78] sm:$0xff] }
  0x2d   :  { %v1216_v2 = vsub.f32 %v425_v26, %v1189_v53 }
  0x2e   :  { %323 = vmatpush.msrb.mxu0 %v123_v39  ;;  %376 = vmatpush.msrb.mxu1 %v857_v4  ;;  %v430_v4 = vld [vmem:[%s1429_s3 + $0x70] sm:$0xff] }
  0x2f   :  { %251 = vmatmul.f32.gmra.mxu2 %v83_v8  ;;  %296 = vmatmul.f32.gmra.mxu3 %v84_v44  ;;  %v523_v30 = vand.u32 4294901760, %v1216_v2 }
  0x30   :  { %327 = vmatpush.msrb.mxu0 %v129_v45  ;;  %378 = vmatpush.msrb.mxu1 %v859_v5  ;;  %v1136_v5 = vand.u32 4294901760, %v431_v3 }
  0x32   :  { %331 = vmatpush.msrb.mxu0 %v135_v51  ;;  %380 = vmatpush.msrb.mxu1 %v870_v9  ;;  %v1138_v9 = vand.u32 4294901760, %v430_v4  ;;  %v1165_v28 = vsub.f32 %v431_v3, %v1136_v5  ;;  %v499_v51 = vand.u32 4294901760, %v1171_v34 }
  0x33   :  { %192 = vmatmul.f32.gmra.mxu1 %v1059_v49  ;;  %437 = vmatpush.msrb.mxu2 %v1136_v5 }
  0x34   :  { %335 = vmatpush.msrb.mxu0 %v141_v57  ;;  %382 = vmatpush.msrb.mxu1 %v872_v10  ;;  %v1152_v10 = vand.u32 4294901760, %v428_v19  ;;  %v1168_v29 = vsub.f32 %v430_v4, %v1138_v9  ;;  %v487_v45 = vand.u32 4294901760, %v1165_v28  ;;  %v500_v37 = vsub.f32 %v1171_v34, %v499_v51 }
  0x35   :  { %439 = vmatpush.msrb.mxu2 %v1138_v9 }
  0x36   :  { %339 = vmatpush.msrb.mxu0 %v147_v0  ;;  %384 = vmatpush.msrb.mxu1 %v874_v11  ;;  %v1174_v39 = vsub.f32 %v428_v19, %v1152_v10  ;;  %v424_v11 = vld [vmem:[%s1429_s3 + $0x40] sm:$0xff]  ;;  %v493_v47 = vand.u32 4294901760, %v1168_v29  ;;  %v1194_v0 = vsub.f32 %v426_v21, %v1156_v23  ;;  %v501_v7 = vand.u32 4294901760, %v500_v37 }
  0x37   :  { %441 = vmatpush.msrb.mxu2 %v1140_v17  ;;  %v554_v19 = vsub.f32 %v1309_v52, %v553_v14 }
  0x38   :  { %343 = vmatpush.msrb.mxu0 %v153_v13  ;;  %386 = vmatpush.msrb.mxu1 %v889_v16  ;;  %v505_v57 = vand.u32 4294901760, %v1174_v39  ;;  %v488_v16 = vsub.f32 %v1165_v28, %v487_v45  ;;  %v494_v59 = vsub.f32 %v1168_v29, %v493_v47  ;;  %v1205_v13 = vand.u32 4294901760, %v424_v11 }
  0x39   :  { %v517_v1 = vand.u32 4294901760, %v1194_v0  ;;  %443 = vmatpush.msrb.mxu2 %v1152_v10 }
  0x3a   :  { %347 = vmatpush.msrb.mxu0 %v159_v36  ;;  %388 = vmatpush.msrb.mxu1 %v908_v24  ;;  %v489_v24 = vand.u32 4294901760, %v488_v16  ;;  %v495_v36 = vand.u32 4294901760, %v494_v59  ;;  %v506_v8 = vsub.f32 %v1174_v39, %v505_v57  ;;  %v418_v16 = vld [vmem:[%s1429_s3 + $0x10] sm:$0xff] }
  0x3b   :  { %445 = vmatpush.msrb.mxu2 %v1154_v22 }
  0x3c   :  { %351 = vmatpush.msrb.mxu0 %v165_v38  ;;  %390 = vmatpush.msrb.mxu1 %v915_v27  ;;  %v1227_v27 = vsub.f32 %v424_v11, %v1205_v13  ;;  %v512_v38 = vsub.f32 %v1178_v42, %v511_v46  ;;  %v1336_v11 = vand.u32 4294901760, %v419_v20 }
  0x3d   :  { %490 = vmatpush.msrb.mxu3 %v489_v24  ;;  %447 = vmatpush.msrb.mxu2 %v1156_v23  ;;  %v1347_v24 = vand.u32 4294901760, %v418_v16 }
  0x3e   :  { %355 = vmatpush.msrb.mxu0 %v171_v55  ;;  %392 = vmatpush.msrb.mxu1 %v938_v35  ;;  %v507_v35 = vand.u32 4294901760, %v506_v8  ;;  %v518_v55 = vsub.f32 %v1194_v0, %v517_v1  ;;  %v529_v40 = vand.u32 4294901760, %v1227_v27  ;;  %v1345_v37 = vsub.f32 %v419_v20, %v1336_v11  ;;  %v417_v8 = vld [vmem:[%s1429_s3 + $0x8] sm:$0xff] }
  0x3f   :  { %496 = vmatpush.msrb.mxu3 %v495_v36  ;;  %449 = vmatpush.msrb.mxu2 %v1189_v53  ;;  %v555_v36 = vand.u32 4294901760, %v554_v19 }
  0x40   :  { %359 = vmatpush.msrb.mxu0 %v177_v58  ;;  %394 = vmatpush.msrb.mxu1 %v950_v41  ;;  %v513_v41 = vand.u32 4294901760, %v512_v38  ;;  %v524_v58 = vsub.f32 %v1216_v2, %v523_v30  ;;  %v519_v12 = vand.u32 4294901760, %v518_v55  ;;  %v559_v38 = vand.u32 4294901760, %v1345_v37 }
  0x41   :  { %502 = vmatpush.msrb.mxu3 %v501_v7  ;;  %451 = vmatpush.msrb.mxu2 %v1205_v13  ;;  %v416_v7 = vld [vmem:[%s1429_s3] sm:$0xff]  ;;  %v1360_v55 = vand.u32 4294901760, %v417_v8 }
  0x42   :  { %363 = vmatpush.msrb.mxu0 %v183_v32  ;;  %396 = vmatpush.msrb.mxu1 %v968_v48  ;;  %v530_v48 = vsub.f32 %v1227_v27, %v529_v40 }
  0x43   :  { %365 = vmatmul.f32.vlgmr.msrb.gmra.mxu0 %v1028_v18  ;;  %508 = vmatpush.msrb.mxu3 %v507_v35  ;;  %v564_v35 = vsub.f32 %v418_v16, %v1347_v24 }
  0x44   :  { %398 = vmatpush.msrb.mxu1 %v983_v54  ;;  %592 = vmatpush.msra.mxu0 %v1165_v28  ;;  %v525_v54 = vand.u32 4294901760, %v524_v58  ;;  %v531_v56 = vand.u32 4294901760, %v530_v48  ;;  %v560_v58 = vsub.f32 %v1345_v37, %v559_v38  ;;  %v570_v48 = vsub.f32 %v417_v8, %v1360_v55 }
  0x45   :  { %514 = vmatpush.msrb.mxu3 %v513_v41  ;;  %v1362_v41 = vand.u32 4294901760, %v416_v7 }
  0x46   :  { %400 = vmatpush.msrb.mxu1 %v998_v60  ;;  %595 = vmatpush.msra.mxu0 %v1168_v29  ;;  %v423_v60 = vld [vmem:[%s1429_s3 + $0x38] sm:$0xff] }
  0x47   :  { %520 = vmatpush.msrb.mxu3 %v519_v12  ;;  %v565_v12 = vand.u32 4294901760, %v564_v35 }
  0x48   :  { %402 = vmatpush.msrb.mxu1 %v1016_v6  ;;  %598 = vmatpush.msra.mxu0 %v1171_v34  ;;  %v422_v6 = vld [vmem:[%s1429_s3 + $0x30] sm:$0xff] }
  0x49   :  { %526 = vmatpush.msrb.mxu3 %v525_v54  ;;  %v576_v54 = vsub.f32 %v416_v7, %v1362_v41 }
  0x4a   :  { %404 = vmatpush.msrb.mxu1 %v1030_v25  ;;  %601 = vmatpush.msra.mxu0 %v1174_v39  ;;  %v1286_v25 = vand.u32 4294901760, %v423_v60 }
  0x4b   :  { %369 = vmatmul.f32.gmra.mxu0 %v1059_v49  ;;  %406 = vmatmul.f32.vlgmr.msrb.gmra.mxu1 %v1028_v18  ;;  %v421_v18 = vld [vmem:[%s1429_s3 + $0x28] sm:$0xff] }
  0x4c   :  { %650 = vmatpush.msra.mxu1 %v1136_v5  ;;  %604 = vmatpush.msra.mxu0 %v1178_v42  ;;  %v1290_v32 = vand.u32 4294901760, %v421_v18  ;;  %v1298_v43 = vsub.f32 %v423_v60, %v1286_v25  ;;  %v566_v60 = vsub.f32 %v564_v35, %v565_v12 }
  0x4d   :  { %532 = vmatpush.msrb.mxu3 %v531_v56  ;;  %453 = vmatpush.msrb.mxu2 %v1286_v25  ;;  %v561_v56 = vand.u32 4294901760, %v560_v58 }
  0x4e   :  { %652 = vmatpush.msra.mxu1 %v1138_v9  ;;  %607 = vmatpush.msra.mxu0 %v1194_v0  ;;  %v1304_v50 = vsub.f32 %v421_v18, %v1290_v32  ;;  %v535_v61 = vand.u32 4294901760, %v1298_v43  ;;  %v577_v18 = vand.u32 4294901760, %v576_v54  ;;  %v567_v31 = vand.u32 4294901760, %v566_v60 }
  0x50   :  { %654 = vmatpush.msra.mxu1 %v1140_v17  ;;  %610 = vmatpush.msra.mxu0 %v1216_v2  ;;  %v547_v63 = vand.u32 4294901760, %v1304_v50  ;;  %v536_v3 = vsub.f32 %v1298_v43, %v535_v61 }
  0x52   :  { %656 = vmatpush.msra.mxu1 %v1152_v10  ;;  %613 = vmatpush.msra.mxu0 %v1227_v27  ;;  %v548_v15 = vsub.f32 %v1304_v50, %v547_v63  ;;  %v537_v21 = vand.u32 4294901760, %v536_v3 }
  0x53   :  { %410 = vmatmul.f32.gmra.mxu1 %v1059_v49  ;;  %v1288_v49 = vand.u32 4294901760, %v422_v6 }
  0x54   :  { %658 = vmatpush.msra.mxu1 %v1154_v22  ;;  %616 = vmatpush.msra.mxu0 %v1298_v43  ;;  %v549_v59 = vand.u32 4294901760, %v548_v15 }
  0x55   :  { %v1301_v44 = vsub.f32 %v422_v6, %v1288_v49  ;;  %455 = vmatpush.msrb.mxu2 %v1288_v49  ;;  %538 = vmatpush.msrb.mxu3 %v537_v21  ;;  %v571_v6 = vand.u32 4294901760, %v570_v48 }
  0x56   :  { %660 = vmatpush.msra.mxu1 %v1156_v23 }
  0x57   :  { %v541_v62 = vand.u32 4294901760, %v1301_v44  ;;  %457 = vmatpush.msrb.mxu2 %v1290_v32  ;;  %619 = vmatpush.msra.mxu0 %v1301_v44  ;;  %v572_v3 = vsub.f32 %v570_v48, %v571_v6 }
  0x58   :  { %662 = vmatpush.msra.mxu1 %v1189_v53 }
  0x59   :  { %v542_v4 = vsub.f32 %v1301_v44, %v541_v62  ;;  %459 = vmatpush.msrb.mxu2 %v1295_v33  ;;  %622 = vmatpush.msra.mxu0 %v1304_v50  ;;  %v573_v15 = vand.u32 4294901760, %v572_v3 }
  0x5a   :  { %664 = vmatpush.msra.mxu1 %v1205_v13 }
  0x5b   :  { %v543_v26 = vand.u32 4294901760, %v542_v4  ;;  %461 = vmatpush.msrb.mxu2 %v1336_v11  ;;  %625 = vmatpush.msra.mxu0 %v1309_v52  ;;  %v578_v4 = vsub.f32 %v576_v54, %v577_v18 }
  0x5c   :  { %666 = vmatpush.msra.mxu1 %v1286_v25 }
  0x5d   :  { %544 = vmatpush.msrb.mxu3 %v543_v26  ;;  %463 = vmatpush.msrb.mxu2 %v1347_v24  ;;  %v579_v19 = vand.u32 4294901760, %v578_v4  ;;  %v815_v26 = vld [vmem:[%s1430_s4] ss:$0 sm:$0xff] }
  0x5e   :  { %668 = vmatpush.msra.mxu1 %v1288_v49  ;;  %628 = vmatpush.msra.mxu0 %v1345_v37 }
  0x5f   :  { %550 = vmatpush.msrb.mxu3 %v549_v59  ;;  %465 = vmatpush.msrb.mxu2 %v1360_v55 }
  0x60   :  { %670 = vmatpush.msra.mxu1 %v1290_v32  ;;  %631 = vmatpush.msra.mxu0 %v564_v35 }
  0x61   :  { %556 = vmatpush.msrb.mxu3 %v555_v36  ;;  %467 = vmatpush.msrb.mxu2 %v1362_v41 }
  0x62   :  { %672 = vmatpush.msra.mxu1 %v1295_v33  ;;  %634 = vmatpush.msra.mxu0 %v570_v48 }
  0x63   :  { %697 = vmatpush.msra.mxu2 %v487_v45  ;;  %562 = vmatpush.msrb.mxu3 %v561_v56 }
  0x64   :  { %674 = vmatpush.msra.mxu1 %v1336_v11  ;;  %637 = vmatpush.msra.mxu0 %v576_v54 }
  0x65   :  { %701 = vmatpush.msra.mxu2 %v493_v47  ;;  %568 = vmatpush.msrb.mxu3 %v567_v31 }
  0x66   :  { %676 = vmatpush.msra.mxu1 %v1347_v24 }
  0x67   :  { %705 = vmatpush.msra.mxu2 %v499_v51  ;;  %574 = vmatpush.msrb.mxu3 %v573_v15 }
  0x68   :  { %678 = vmatpush.msra.mxu1 %v1360_v55 }
  0x69   :  { %709 = vmatpush.msra.mxu2 %v505_v57  ;;  %580 = vmatpush.msrb.mxu3 %v579_v19 }
  0x6a   :  { %680 = vmatpush.msra.mxu1 %v1362_v41 }
  0x6b   :  { %768 = vmatpush.msra.mxu3 %v1136_v5  ;;  %713 = vmatpush.msra.mxu2 %v511_v46 }
  0x6d   :  { %770 = vmatpush.msra.mxu3 %v1138_v9  ;;  %717 = vmatpush.msra.mxu2 %v517_v1 }
  0x6f   :  { %772 = vmatpush.msra.mxu3 %v1140_v17  ;;  %721 = vmatpush.msra.mxu2 %v523_v30  ;;  %v814_v17 = vld [vmem:[%s1427_s2] ss:$0 sm:$0xff] }
  0x71   :  { %774 = vmatpush.msra.mxu3 %v1152_v10  ;;  %725 = vmatpush.msra.mxu2 %v529_v40 }
  0x73   :  { %776 = vmatpush.msra.mxu3 %v1154_v22  ;;  %729 = vmatpush.msra.mxu2 %v535_v61 }
  0x75   :  { %778 = vmatpush.msra.mxu3 %v1156_v23  ;;  %733 = vmatpush.msra.mxu2 %v541_v62 }
  0x77   :  { %780 = vmatpush.msra.mxu3 %v1189_v53  ;;  %737 = vmatpush.msra.mxu2 %v547_v63 }
  0x79   :  { %782 = vmatpush.msra.mxu3 %v1205_v13  ;;  %741 = vmatpush.msra.mxu2 %v553_v14 }
  0x7b   :  { %784 = vmatpush.msra.mxu3 %v1286_v25  ;;  %745 = vmatpush.msra.mxu2 %v559_v38 }
  0x7d   :  { %786 = vmatpush.msra.mxu3 %v1288_v49  ;;  %749 = vmatpush.msra.mxu2 %v565_v12 }
  0x7f   :  { %788 = vmatpush.msra.mxu3 %v1290_v32  ;;  %753 = vmatpush.msra.mxu2 %v571_v6 }
  0x81   :  { %790 = vmatpush.msra.mxu3 %v1295_v33  ;;  %757 = vmatpush.msra.mxu2 %v577_v18 }
  0x83   :  { %792 = vmatpush.msra.mxu3 %v1336_v11 }
  0x85   :  { %794 = vmatpush.msra.mxu3 %v1347_v24 }
  0x87   :  { %796 = vmatpush.msra.mxu3 %v1360_v55 }
  0x89   :  { %798 = vmatpush.msra.mxu3 %v1362_v41 }
  0xa0   :  { %v80_v5 = vpop.f32.mrf.mxu0 }
  0xa1   :  { %v81_v22 = vadd.f32 %v814_v17, %v80_v5 }
  0xa8   :  { %v189_v9 = vpop.f32.mrf.mxu1  ;;  %v88_v10 = vpop.f32.mrf.mxu0 }
  0xa9   :  { %v190_v28 = vadd.f32 %v189_v9, %v81_v22  ;;  %v89_v39 = vadd.f32 %v814_v17, %v88_v10 }
  0xaa   :  { %v247_v23 = vpop.f32.mrf.mxu2  ;;  %v291_v34 = vpop.f32.mrf.mxu3 }
  0xab   :  { %v248_v42 = vadd.f32 %v247_v23, %v190_v28 }
  0xad   :  { %v292_v47 = vadd.f32 %v291_v34, %v248_v42 }
  0xb0   :  { %v193_v29 = vpop.f32.mrf.mxu1 }
  0xb1   :  { %v194_v51 = vadd.f32 %v193_v29, %v89_v39 }
  0xb2   :  { %v252_v53 = vpop.f32.mrf.mxu2  ;;  %v297_v2 = vpop.f32.mrf.mxu3 }
  0xb3   :  { %v253_v13 = vadd.f32 %v252_v53, %v194_v51 }
  0xb5   :  { %v298_v30 = vadd.f32 %v297_v2, %v253_v13 }
  0xc0   :  { %v366_v45 = vpop.f32.mrf.mxu0 }
  0xc1   :  { %v367_v57 = vadd.f32 %v366_v45, %v292_v47 }
  0xc8   :  { %v407_v0 = vpop.f32.mrf.mxu1  ;;  %v370_v27 = vpop.f32.mrf.mxu0 }
  0xc9   :  { %v408_v46 = vadd.f32 %v407_v0, %v367_v57  ;;  %v371_v25 = vadd.f32 %v370_v27, %v298_v30 }
  0xcb   :  { %v414_v1 = vmax.f32 %v408_v46, 0.0 }
  0xcd   :  { %v468_v40 = vand.u32 4294901760, %v414_v1 }
  0xcf   :  { %v469_v49 = vsub.f32 %v414_v1, %v468_v40  ;;  %582 = vmatmul.f32.vlgmr.msrb.gmra.mxu3 %v468_v40 }
  0xd0   :  { %v411_v32 = vpop.f32.mrf.mxu1 }
  0xd1   :  { %v412_v33 = vadd.f32 %v411_v32, %v371_v25  ;;  %640 = vmatmul.f32.vlgmr.msra.gmra.mxu0 %v469_v49  ;;  %v470_v43 = vand.u32 4294901760, %v469_v49 }
  0xd3   :  { %v415_v44 = vmax.f32 %v412_v33, 0.0  ;;  %684 = vmatmul.f32.vlgmr.msra.gmra.mxu1 %v470_v43  ;;  %v471_v50 = vsub.f32 %v469_v49, %v470_v43 }
  0xd5   :  { %v476_v52 = vand.u32 4294901760, %v415_v44  ;;  %v472_v61 = vand.u32 4294901760, %v471_v50 }
  0xd7   :  { %v477_v62 = vsub.f32 %v415_v44, %v476_v52  ;;  %473 = vmatmul.f32.vlgmr.msrb.gmra.mxu2 %v472_v61  ;;  %586 = vmatmul.f32.gmra.mxu3 %v476_v52 }
  0xd9   :  { %645 = vmatmul.f32.gmra.mxu0 %v477_v62  ;;  %v478_v63 = vand.u32 4294901760, %v477_v62 }
  0xdb   :  { %690 = vmatmul.f32.gmra.mxu1 %v478_v63  ;;  %v479_v14 = vsub.f32 %v477_v62, %v478_v63 }
  0xdd   :  { %v480_v20 = vand.u32 4294901760, %v479_v14 }
  0xdf   :  { %481 = vmatmul.f32.gmra.mxu2 %v480_v20  ;;  %800 = vmatmul.f32.vlgmr.msra.gmra.mxu3 %v468_v40 }
  0xe7   :  { %759 = vmatmul.f32.vlgmr.msra.gmra.mxu2 %v468_v40  ;;  %804 = vmatmul.f32.gmra.mxu3 %v476_v52 }
  0xef   :  { %763 = vmatmul.f32.gmra.mxu2 %v476_v52 }
 0x14e   :  { %v641_v24 = vpop.f32.mrf.mxu0 }
 0x150   :  { %v685_v38 = vpop.f32.mrf.mxu1 }
 0x152   :  { %v583_v21 = vpop.f32.mrf.mxu3 }
 0x156   :  { %v646_v48 = vpop.f32.mrf.mxu0 }
 0x158   :  { %v691_v60 = vpop.f32.mrf.mxu1 }
 0x15a   :  { %v474_v11 = vpop.f32.mrf.mxu2  ;;  %v587_v59 = vpop.f32.mrf.mxu3 }
 0x15b   :  { %v475_v16 = vadd.f32 %v815_v26, %v474_v11 }
 0x15d   :  { %v584_v37 = vadd.f32 %v583_v21, %v475_v16 }
 0x15f   :  { %v642_v7 = vadd.f32 %v641_v24, %v584_v37 }
 0x161   :  { %v686_v55 = vadd.f32 %v685_v38, %v642_v7 }
 0x162   :  { %v482_v36 = vpop.f32.mrf.mxu2  ;;  %v801_v41 = vpop.f32.mrf.mxu3 }
 0x163   :  { %v483_v8 = vadd.f32 %v815_v26, %v482_v36 }
 0x165   :  { %v588_v35 = vadd.f32 %v587_v59, %v483_v8 }
 0x167   :  { %v647_v56 = vadd.f32 %v646_v48, %v588_v35 }
 0x169   :  { %v692_v6 = vadd.f32 %v691_v60, %v647_v56 }
 0x16a   :  { %v760_v58 = vpop.f32.mrf.mxu2  ;;  %v805_v3 = vpop.f32.mrf.mxu3 }
 0x16b   :  { %v761_v12 = vadd.f32 %v760_v58, %v686_v55 }
 0x16d   :  { %v802_v54 = vadd.f32 %v801_v41, %v761_v12 }
 0x16f   :  { %808 = vst [vmem:[%s1431_s5] sm:$0xff] %v802_v54 }
 0x172   :  { %v764_v18 = vpop.f32.mrf.mxu2 }
 0x173   :  { %v765_v31 = vadd.f32 %v764_v18, %v692_v6 }
 0x175   :  { %v806_v4 = vadd.f32 %v805_v3, %v765_v31 }
 0x177   :  { %809 = vst [vmem:[%s1431_s5 + $0x8] sm:$0xff] %v806_v4 }

</bundles_post_ra>
